<compile_context>
chip_gen: v7x
topology: tpu7x:2x2x1
jax: 0.10.0
libtpu: 0.0.40
codegen_flags: <defaults>
</compile_context>

<pallas_src>
import math
import functools

import jax
import jax.numpy as jnp
from jax.experimental import pallas as pl
from jax.experimental.pallas import tpu as pltpu  # noqa: F401  (not needed here)


# ------------------------------- kernel -------------------------------------

def _time_embedding_kernel(t_ref, f_ref, w1s_ref, w1c_ref, b1_ref,
                           w2_ref, b2_ref, o_ref, *, valid_rows):
    """Fused sinusoidal embedding -> lin1 -> SiLU -> lin2 -> SiLU.

    t_ref : (Bp, 1)   f32   timesteps (rows >= valid_rows are zero padding)
    f_ref : (1, Kp)   f32   [freqs, 0...]          (Kp = round_up(half, 128))
    w1s   : (Kp, Np)  f32   W1.T[:half]  zero-padded   (Np = round_up(4*dim,128))
    w1c   : (Kp, Np)  f32   W1.T[half:]  zero-padded
    b1    : (1, Np)   f32
    w2    : (Np, Np)  f32   W2.T zero-padded
    b2    : (1, Np)   f32
    o_ref : (valid_rows, Np) f32

    Padding correctness: padded freq lanes are 0, so sin(0)=0 contributes
    nothing; cos(0)=1 lands on zero weight rows of w1c; padded hidden columns
    get bias 0 -> SiLU(0)=0 -> contribute nothing to the second matmul.
    """
    args = t_ref[...] * f_ref[...]                                   # (Bp, Kp)

    h = (jnp.dot(jnp.sin(args), w1s_ref[...],
                 preferred_element_type=jnp.float32)
         + jnp.dot(jnp.cos(args), w1c_ref[...],
                   preferred_element_type=jnp.float32)
         + b1_ref[...])                                              # (Bp, Np)
    h = h * jax.nn.sigmoid(h)                                        # SiLU

    h = jnp.dot(h, w2_ref[...], preferred_element_type=jnp.float32) \
        + b2_ref[...]                                                # (Bp, Np)
    h = h * jax.nn.sigmoid(h)                                        # SiLU

    o_ref[...] = h[:valid_rows].astype(o_ref.dtype)


# --------------------------- one-time param prep ----------------------------

def _round_up(x, m):
    return (x + m - 1) // m * m


def prepare_params(params, dim):
    """Hoisted weight prep: transpose, sin/cos split, lane-aligned zero pad."""
    half = dim // 2
    n = 4 * dim
    kp = _round_up(half, 128)      # lane-aligned K for the sinusoid matmuls
    np_ = _round_up(n, 128)        # lane-aligned hidden width

    freqs = jnp.exp(-math.log(10000.0) *
                    jnp.arange(half, dtype=jnp.float32) / half)
    f_pad = jnp.zeros((1, kp), jnp.float32).at[0, :half].set(freqs)

    w1t = params["lin1_w"].astype(jnp.float32).T                     # (dim, n)
    w1s = jnp.zeros((kp, np_), jnp.float32).at[:half, :n].set(w1t[:half])
    w1c = jnp.zeros((kp, np_), jnp.float32).at[:half, :n].set(w1t[half:])
    b1 = jnp.zeros((1, np_), jnp.float32).at[0, :n].set(
        params["lin1_b"].astype(jnp.float32))

    w2t = jnp.zeros((np_, np_), jnp.float32).at[:n, :n].set(
        params["lin2_w"].astype(jnp.float32).T)
    b2 = jnp.zeros((1, np_), jnp.float32).at[0, :n].set(
        params["lin2_b"].astype(jnp.float32))

    return dict(f_pad=f_pad, w1s=w1s, w1c=w1c, b1=b1, w2t=w2t, b2=b2)


# ------------------------------- forward ------------------------------------

@functools.partial(jax.jit, static_argnames=("out_dim",))
def time_embedding(t, prep, *, out_dim):
    """Pallas forward of the PyTorch TimeEmbedding module (single fused call)."""
    B = t.shape[0]
    np_ = prep["w2t"].shape[0]
    Bp = _round_up(B, 8)                              # sublane-aligned M

    t2 = jnp.zeros((Bp, 1), jnp.float32).at[:B, 0].set(t.astype(jnp.float32))

    out = pl.pallas_call(
        functools.partial(_time_embedding_kernel, valid_rows=B),
        out_shape=jax.ShapeDtypeStruct((B, np_), jnp.float32),
    )(t2, prep["f_pad"], prep["w1s"], prep["w1c"], prep["b1"],
      prep["w2t"], prep["b2"])

    return out if np_ == out_dim else out[:, :out_dim]


# ------------------------------ reference -----------------------------------

def time_embedding_ref(t, p, dim):
    """Pure-JAX f32 reference for correctness checking."""
    half = dim // 2
    freqs = jnp.exp(-math.log(10000.0) *
                    jnp.arange(half, dtype=jnp.float32) / half)
    args = t.astype(jnp.float32)[:, None] * freqs[None]
    emb = jnp.concatenate([jnp.sin(args), jnp.cos(args)], axis=-1)
    h = jax.nn.silu(emb @ p["lin1_w"].T + p["lin1_b"])
    h = jax.nn.silu(h @ p["lin2_w"].T + p["lin2_b"])
    return h


# --------------------------------- main -------------------------------------

if __name__ == "__main__":
    dim = 32          # TimeEmbedding(dim): hidden = 4*dim = 128 (lane-dense)
    B = 2

    key = jax.random.PRNGKey(0)
    kt, k1, k2, k3, k4 = jax.random.split(key, 5)

    t = jax.random.uniform(kt, (B,), jnp.float32, 0.0, 100.0)
    params = dict(
        lin1_w=jax.random.normal(k1, (4 * dim, dim), jnp.float32)
        / math.sqrt(dim),
        lin1_b=jax.random.normal(k2, (4 * dim,), jnp.float32) * 0.01,
        lin2_w=jax.random.normal(k3, (4 * dim, 4 * dim), jnp.float32)
        / math.sqrt(4 * dim),
        lin2_b=jax.random.normal(k4, (4 * dim,), jnp.float32) * 0.01,
    )

    prep = prepare_params(params, dim)        # one-time weight prep (hoisted)

    out = time_embedding(t, prep, out_dim=4 * dim)
    out = jax.block_until_ready(out)

    assert out.shape == (B, 4 * dim), out.shape
    assert bool(jnp.all(jnp.isfinite(out)))

    ref = time_embedding_ref(t, params, dim)
    err = float(jnp.max(jnp.abs(out - ref)))
    # Full f32 activation/weight path; loose bound only to tolerate MXU default
    # matmul precision (observed error is typically ~1e-3 or better).
    assert err < 5e-2, f"max abs err vs f32 reference: {err}"

    print("KERNEL_OK")
</pallas_src>

<mosaic_0001>
module attributes {stable_mosaic.version = 11 : i64} {
  func.func @_time_embedding_kernel(%arg0: memref<8x1xf32, #tpu.memory_space<vmem>>, %arg1: memref<1x128xf32, #tpu.memory_space<vmem>>, %arg2: memref<128x128xf32, #tpu.memory_space<vmem>>, %arg3: memref<128x128xf32, #tpu.memory_space<vmem>>, %arg4: memref<1x128xf32, #tpu.memory_space<vmem>>, %arg5: memref<128x128xf32, #tpu.memory_space<vmem>>, %arg6: memref<1x128xf32, #tpu.memory_space<vmem>>, %arg7: memref<2x128xf32, #tpu.memory_space<vmem>>) attributes {dimension_semantics = [], scalar_prefetch = 0 : i64, scratch_operands = 0 : i64, tpu.core_type = #tpu.core_type<tc>} {
    %c0 = arith.constant 0 : index
    %c0_0 = arith.constant 0 : index
    %0 = vector.load %arg0[%c0, %c0_0] : memref<8x1xf32, #tpu.memory_space<vmem>>, vector<8x1xf32>
    %c0_1 = arith.constant 0 : index
    %c0_2 = arith.constant 0 : index
    %1 = vector.load %arg1[%c0_1, %c0_2] : memref<1x128xf32, #tpu.memory_space<vmem>>, vector<1x128xf32>
    %2 = vector.broadcast %0 : vector<8x1xf32> to vector<8x128xf32>
    %3 = vector.broadcast %1 : vector<1x128xf32> to vector<8x128xf32>
    %4 = arith.mulf %2, %3 : vector<8x128xf32>
    %5 = math.sin %4 : vector<8x128xf32>
    %c0_3 = arith.constant 0 : index
    %c0_4 = arith.constant 0 : index
    %6 = vector.load %arg2[%c0_3, %c0_4] : memref<128x128xf32, #tpu.memory_space<vmem>>, vector<128x128xf32>
    %cst = arith.constant dense<0.000000e+00> : vector<8x128xf32>
    %7 = tpu.matmul %5, %6, %cst {dimension_numbers = #tpu.dot_dimension_numbers<[1], [0], [0], [1], [0, 0, 1, 1], [], []>} : vector<8x128xf32>, vector<128x128xf32>, vector<8x128xf32> -> vector<8x128xf32>
    %8 = math.cos %4 : vector<8x128xf32>
    %c0_5 = arith.constant 0 : index
    %c0_6 = arith.constant 0 : index
    %9 = vector.load %arg3[%c0_5, %c0_6] : memref<128x128xf32, #tpu.memory_space<vmem>>, vector<128x128xf32>
    %cst_7 = arith.constant dense<0.000000e+00> : vector<8x128xf32>
    %10 = tpu.matmul %8, %9, %cst_7 {dimension_numbers = #tpu.dot_dimension_numbers<[1], [0], [0], [1], [0, 0, 1, 1], [], []>} : vector<8x128xf32>, vector<128x128xf32>, vector<8x128xf32> -> vector<8x128xf32>
    %11 = arith.addf %7, %10 : vector<8x128xf32>
    %c0_8 = arith.constant 0 : index
    %c0_9 = arith.constant 0 : index
    %12 = vector.load %arg4[%c0_8, %c0_9] : memref<1x128xf32, #tpu.memory_space<vmem>>, vector<1x128xf32>
    %13 = vector.broadcast %12 : vector<1x128xf32> to vector<8x128xf32>
    %14 = arith.addf %11, %13 : vector<8x128xf32>
    %15 = arith.negf %14 : vector<8x128xf32>
    %16 = math.exp %15 : vector<8x128xf32>
    %cst_10 = arith.constant 1.000000e+00 : f32
    %17 = vector.broadcast %cst_10 : f32 to vector<8x128xf32>
    %18 = arith.addf %17, %16 : vector<8x128xf32>
    %19 = arith.divf %17, %18 : vector<8x128xf32>
    %20 = arith.mulf %14, %19 : vector<8x128xf32>
    %c0_11 = arith.constant 0 : index
    %c0_12 = arith.constant 0 : index
    %21 = vector.load %arg5[%c0_11, %c0_12] : memref<128x128xf32, #tpu.memory_space<vmem>>, vector<128x128xf32>
    %cst_13 = arith.constant dense<0.000000e+00> : vector<8x128xf32>
    %22 = tpu.matmul %20, %21, %cst_13 {dimension_numbers = #tpu.dot_dimension_numbers<[1], [0], [0], [1], [0, 0, 1, 1], [], []>} : vector<8x128xf32>, vector<128x128xf32>, vector<8x128xf32> -> vector<8x128xf32>
    %c0_14 = arith.constant 0 : index
    %c0_15 = arith.constant 0 : index
    %23 = vector.load %arg6[%c0_14, %c0_15] : memref<1x128xf32, #tpu.memory_space<vmem>>, vector<1x128xf32>
    %24 = vector.broadcast %23 : vector<1x128xf32> to vector<8x128xf32>
    %25 = arith.addf %22, %24 : vector<8x128xf32>
    %26 = arith.negf %25 : vector<8x128xf32>
    %27 = math.exp %26 : vector<8x128xf32>
    %cst_16 = arith.constant 1.000000e+00 : f32
    %28 = vector.broadcast %cst_16 : f32 to vector<8x128xf32>
    %29 = arith.addf %28, %27 : vector<8x128xf32>
    %30 = arith.divf %28, %29 : vector<8x128xf32>
    %31 = arith.mulf %25, %30 : vector<8x128xf32>
    %32 = vector.extract_strided_slice %31 {offsets = [0, 0], sizes = [2, 128], strides = [1, 1]} : vector<8x128xf32> to vector<2x128xf32>
    %c0_17 = arith.constant 0 : index
    %c0_18 = arith.constant 0 : index
    %33 = vector.load %arg7[%c0_17, %c0_18] : memref<2x128xf32, #tpu.memory_space<vmem>>, vector<2x128xf32>
    tpu.vector_store %arg7[%c0_17, %c0_18], %32 {strides = array<i32>} : memref<2x128xf32, #tpu.memory_space<vmem>>, vector<2x128xf32>,
    return
  }
}

</mosaic_0001>

<bundles_post_ra>
// kernel: time_embedding.1
= control target key start
LH: loop header
LB: loop body
LE: loop exit
PB: predicated region body
PF: predicated region fallthrough
CT: control target
= control target key end

     0   :  { %12 = vsyncpa [#allocation3], 0  ;;  %s1144_s0 = inlined_call_operand.vmem [shape: f32[8,1], index: 0, kind: input, shape index: {}]   ;;  %s1145_s1 = inlined_call_operand.vmem [shape: f32[1,128], index: 1, kind: input, shape index: {}]   ;;  %s1146_s2 = inlined_call_operand.hbm [shape: f32[128,128], index: 2, kind: input, shape index: {}]   ;;  %s1147_s3 = inlined_call_operand.hbm [shape: f32[128,128], index: 3, kind: input, shape index: {}]   ;;  %s1148_s4 = inlined_call_operand.vmem [shape: f32[1,128], index: 4, kind: input, shape index: {}]   ;;  %s1149_s5 = inlined_call_operand.hbm [shape: f32[128,128], index: 5, kind: input, shape index: {}]   ;;  %s1150_s6 = inlined_call_operand.vmem [shape: f32[1,128], index: 6, kind: input, shape index: {}]   ;;  %s1151_s7 = inlined_call_operand.hbm [shape: f32[2,128], index: 7, kind: output, shape index: {}]  }
   0x1   :  { %13 = vsyncpa [#allocation6], 0 }
   0x2   :  { %14 = vsyncpa [#allocation4], 0  ;;  %s961_s24 = smov [#allocation5]   ;;  %s962_s26 = smov [#allocation2]  }
   0x3   :  { %s36_s25 = sshll.u32 %s961_s24, 4  ;;  %s24_s27 = sshll.u32 %s962_s26, 4  ;;  %s37_s25 = int_to_ptr.vmem [resolvable:$true] %s36_s25  ;;  %s1017_s27 = int_to_ptr.vmem [resolvable:$true] %s24_s27 }
   0x4   :  { %s867_s30 = scalar_lea.hbm %s1147_s3, 2048 }
   0x5   :  { %p868_p0 = scmp.ne.s32.totalorder %s1147_s3, %s867_s30  ;;  %p871_p1 = scmp.lt.u32.totalorder %s867_s30, %s1147_s3 }
   0x7   :  { %p873_p2 = pnand %p871_p1, %p868_p0 }
   0x9   :  { %876 = shalt.err (!%p873_p2)
}
   0xa   :  { %s877_s12 = scalar_lea.vmem %s37_s25, 2048  ;;  %p882_p4 = scmp.lt.s32.totalorder %s37_s25, %s37_s25 }
   0xb   :  { %p878_p3 = scmp.ne.s32.totalorder %s37_s25, %s877_s12  ;;  %p883_p5 = scmp.lt.s32.totalorder %s877_s12, %s877_s12 }
   0xd   :  { %p884_p6 = por %p883_p5, %p882_p4 }
   0xf   :  { %p885_p7 = pnand %p884_p6, %p878_p3 }
  0x11   :  { %888 = shalt.err (!%p885_p7)
}
  0x12   :  { %s963_s13 = smov 128   ;;  %s964_s14 = smov 8  }
  0x13   :  { %42 = dma.hbm_to_vmem [thread:$0]  %s1147_s3, 2048, %s37_s25, [#allocation6], %s963_s13, %s963_s13, %s964_s14  }
  0x14   :  { %s889_s19 = scalar_lea.hbm %s1146_s2, 2048 }
  0x15   :  { %p890_p8 = scmp.ne.s32.totalorder %s1146_s2, %s889_s19  ;;  %p893_p9 = scmp.lt.u32.totalorder %s889_s19, %s1146_s2 }
  0x17   :  { %p895_p10 = pnand %p893_p9, %p890_p8 }
  0x19   :  { %898 = shalt.err (!%p895_p10)
}
  0x1a   :  { %s899_s24 = scalar_lea.vmem %s1017_s27, 2048  ;;  %p904_p12 = scmp.lt.s32.totalorder %s1017_s27, %s1017_s27 }
  0x1b   :  { %p900_p11 = scmp.ne.s32.totalorder %s1017_s27, %s899_s24  ;;  %p905_p13 = scmp.lt.s32.totalorder %s899_s24, %s899_s24 }
  0x1d   :  { %p906_p0 = por %p905_p13, %p904_p12 }
  0x1f   :  { %p907_p1 = pnand %p906_p0, %p900_p11 }
  0x21   :  { %910 = shalt.err (!%p907_p1)
}
  0x22   :  { %30 = dma.hbm_to_vmem [thread:$0]  %s1146_s2, 2048, %s1017_s27, [#allocation3], %s963_s13, %s963_s13, %s964_s14  }
  0x23   :  { %s965_s26 = smov [#allocation7]   ;;  %s911_s8 = scalar_lea.hbm %s1149_s5, 2048 }
  0x24   :  { %s50_s28 = sshll.u32 %s965_s26, 4  ;;  %p912_p2 = scmp.ne.s32.totalorder %s1149_s5, %s911_s8  ;;  %s51_s28 = int_to_ptr.vmem [resolvable:$true] %s50_s28 }
  0x25   :  { %p915_p3 = scmp.lt.u32.totalorder %s911_s8, %s1149_s5 }
  0x27   :  { %p917_p4 = pnand %p915_p3, %p912_p2 }
  0x29   :  { %920 = shalt.err (!%p917_p4)
}
  0x2a   :  { %s921_s15 = scalar_lea.vmem %s51_s28, 2048  ;;  %p926_p6 = scmp.lt.s32.totalorder %s51_s28, %s51_s28 }
  0x2b   :  { %p922_p5 = scmp.ne.s32.totalorder %s51_s28, %s921_s15  ;;  %p927_p7 = scmp.lt.s32.totalorder %s921_s15, %s921_s15 }
  0x2d   :  { %p928_p8 = por %p927_p7, %p926_p6 }
  0x2f   :  { %p929_p9 = pnand %p928_p8, %p922_p5 }
  0x31   :  { %932 = shalt.err (!%p929_p9)
}
  0x32   :  { %56 = dma.hbm_to_vmem [thread:$0]  %s1149_s5, 2048, %s51_s28, [#allocation6], %s963_s13, %s963_s13, %s964_s14  }
  0x33   :  { %955 = dma.done.wait [#allocation3], 2048  }
  0x34   :  { %956 = vsyncadd [#allocation3], 4294965248 }
  0x35   :  { %957 = dma.done.wait [#allocation6], 4096  }
  0x36   :  { %958 = vsyncadd [#allocation6], 4294963200  ;;  %v966_v0 = vmov 0   ;;  %v68_v1 = vld [vmem:[%s1144_s0] sm:$0xff]  ;;  %v306_v3 = vld [vmem:[#allocation5 + $0x8] sm:$0xff]  ;;  %v967_v7 = vmov 0.0|0.0  }
  0x37   :  { %854 = vset.pattern.permute.xlu0 %v966_v0  ;;  %v305_v2 = vld [vmem:[#allocation5] sm:$0xff]  ;;  %v187_v6 = vld [vmem:[#allocation2 + $0x8] sm:$0xff]  ;;  %762 = vmatprep.subr.bf16.mxu0 %v967_v7  ;;  %v307_v9 = vld [vmem:[#allocation5 + $0x10] sm:$0xff]  ;;  %vm968_vm0 = vmmov 0   ;;  %v969_v32 = vmov 0.0  }
  0x38   :  { %72 = vperm.xlu0 %854, %v68_v1   ;;  %v186_v4 = vld [vmem:[#allocation2] sm:$0xff]  ;;  %v763_v5 = vpack.c.bf16 %v306_v3, %v305_v2  ;;  %786 = vmatprep.subr.bf16.mxu1 %v967_v7  ;;  %v308_v10 = vld [vmem:[#allocation5 + $0x18] sm:$0xff]  ;;  %v188_v11 = vld [vmem:[#allocation2 + $0x10] sm:$0xff]  ;;  %v970_v1 = vmov 683565275  }
  0x39   :  { %v787_v8 = vpack.c.bf16 %v187_v6, %v186_v4  ;;  %v766_v12 = vpack.c.bf16 %v308_v10, %v307_v9  ;;  %v189_v13 = vld [vmem:[#allocation2 + $0x18] sm:$0xff]  ;;  %v309_v15 = vld [vmem:[#allocation5 + $0x20] sm:$0xff]  ;;  %v310_v16 = vld [vmem:[#allocation5 + $0x28] sm:$0xff]  ;;  %689 = vmatprep.mubr.msk.f32.mxu0 %vm968_vm0, %v969_v32  ;;  %724 = vmatprep.mubr.msk.f32.mxu1 %vm968_vm0, %v969_v32  ;;  %v971_v3 = vmov 2475754826  }
  0x3a   :  { %764 = vmatpush3.bf16.msra.mxu0 %v763_v5  ;;  %v790_v14 = vpack.c.bf16 %v189_v13, %v188_v11  ;;  %v190_v17 = vld [vmem:[#allocation2 + $0x20] sm:$0xff]  ;;  %v769_v18 = vpack.c.bf16 %v310_v16, %v309_v15  ;;  %v191_v19 = vld [vmem:[#allocation2 + $0x28] sm:$0xff]  ;;  %v311_v21 = vld [vmem:[#allocation5 + $0x30] sm:$0xff]  ;;  %v972_v6 = vmov 2131351028  }
  0x3b   :  { %788 = vmatpush3.bf16.msra.mxu1 %v787_v8  ;;  %765 = vmatprep.subr.bf16.mxu0 %v967_v7  ;;  %v793_v20 = vpack.c.bf16 %v191_v19, %v190_v17  ;;  %v312_v22 = vld [vmem:[#allocation5 + $0x38] sm:$0xff]  ;;  %v192_v23 = vld [vmem:[#allocation2 + $0x30] sm:$0xff]  ;;  %v313_v27 = vld [vmem:[#allocation5 + $0x40] sm:$0xff]  ;;  %v973_v10 = vmov 2102212464  }
  0x3c   :  { %789 = vmatprep.subr.bf16.mxu1 %v967_v7  ;;  %v772_v24 = vpack.c.bf16 %v312_v22, %v311_v21  ;;  %v193_v25 = vld [vmem:[#allocation2 + $0x38] sm:$0xff]  ;;  %v314_v28 = vld [vmem:[#allocation5 + $0x48] sm:$0xff]  ;;  %v194_v29 = vld [vmem:[#allocation2 + $0x40] sm:$0xff]  ;;  %v974_v13 = vmov 920167782  }
  0x3d   :  { %v796_v26 = vpack.c.bf16 %v193_v25, %v192_v23  ;;  %v775_v30 = vpack.c.bf16 %v314_v28, %v313_v27  ;;  %v195_v31 = vld [vmem:[#allocation2 + $0x48] sm:$0xff]  ;;  %v315_v34 = vld [vmem:[#allocation5 + $0x50] sm:$0xff]  ;;  %v316_v35 = vld [vmem:[#allocation5 + $0x58] sm:$0xff]  ;;  %v975_v16 = vmov 1326507024  }
  0x3e   :  { %767 = vmatpush3.bf16.msra.mxu0 %v766_v12  ;;  %v799_v33 = vpack.c.bf16 %v195_v31, %v194_v29  ;;  %v196_v36 = vld [vmem:[#allocation2 + $0x50] sm:$0xff]  ;;  %v197_v37 = vld [vmem:[#allocation2 + $0x58] sm:$0xff]  ;;  %v778_v38 = vpack.c.bf16 %v316_v35, %v315_v34  ;;  %v317_v40 = vld [vmem:[#allocation5 + $0x60] sm:$0xff] }
  0x3f   :  { %791 = vmatpush3.bf16.msra.mxu1 %v790_v14  ;;  %768 = vmatprep.subr.bf16.mxu0 %v967_v7  ;;  %v802_v39 = vpack.c.bf16 %v197_v37, %v196_v36  ;;  %v318_v41 = vld [vmem:[#allocation5 + $0x68] sm:$0xff]  ;;  %v198_v42 = vld [vmem:[#allocation2 + $0x60] sm:$0xff]  ;;  %v319_v46 = vld [vmem:[#allocation5 + $0x70] sm:$0xff] }
  0x40   :  { %792 = vmatprep.subr.bf16.mxu1 %v967_v7  ;;  %v199_v43 = vld [vmem:[#allocation2 + $0x68] sm:$0xff]  ;;  %v781_v44 = vpack.c.bf16 %v318_v41, %v317_v40  ;;  %v320_v47 = vld [vmem:[#allocation5 + $0x78] sm:$0xff]  ;;  %v200_v48 = vld [vmem:[#allocation2 + $0x70] sm:$0xff] }
  0x41   :  { %v805_v45 = vpack.c.bf16 %v199_v43, %v198_v42  ;;  %v201_v49 = vld [vmem:[#allocation2 + $0x78] sm:$0xff]  ;;  %v784_v50 = vpack.c.bf16 %v320_v47, %v319_v46  ;;  %v593_v52 = vld [vmem:[%s1145_s1] ss:$0 sm:$0xff] }
  0x42   :  { %770 = vmatpush3.bf16.msra.mxu0 %v769_v18  ;;  %v808_v51 = vpack.c.bf16 %v201_v49, %v200_v48 }
  0x43   :  { %794 = vmatpush3.bf16.msra.mxu1 %v793_v20  ;;  %771 = vmatprep.subr.bf16.mxu0 %v967_v7 }
  0x44   :  { %795 = vmatprep.subr.bf16.mxu1 %v967_v7 }
  0x46   :  { %773 = vmatpush3.bf16.msra.mxu0 %v772_v24 }
  0x47   :  { %797 = vmatpush3.bf16.msra.mxu1 %v796_v26  ;;  %774 = vmatprep.subr.bf16.mxu0 %v967_v7 }
  0x48   :  { %798 = vmatprep.subr.bf16.mxu1 %v967_v7 }
  0x4a   :  { %776 = vmatpush3.bf16.msra.mxu0 %v775_v30 }
  0x4b   :  { %800 = vmatpush3.bf16.msra.mxu1 %v799_v33  ;;  %777 = vmatprep.subr.bf16.mxu0 %v967_v7 }
  0x4c   :  { %801 = vmatprep.subr.bf16.mxu1 %v967_v7 }
  0x4e   :  { %779 = vmatpush3.bf16.msra.mxu0 %v778_v38 }
  0x4f   :  { %803 = vmatpush3.bf16.msra.mxu1 %v802_v39  ;;  %780 = vmatprep.subr.bf16.mxu0 %v967_v7 }
  0x50   :  { %804 = vmatprep.subr.bf16.mxu1 %v967_v7 }
  0x52   :  { %782 = vmatpush3.bf16.msra.mxu0 %v781_v44 }
  0x53   :  { %806 = vmatpush3.bf16.msra.mxu1 %v805_v45  ;;  %783 = vmatprep.subr.bf16.mxu0 %v967_v7 }
  0x54   :  { %807 = vmatprep.subr.bf16.mxu1 %v967_v7 }
  0x56   :  { %785 = vmatpush3.bf16.msra.mxu0 %v784_v50 }
  0x57   :  { %809 = vmatpush3.bf16.msra.mxu1 %v808_v51  ;;  %810 = vmatprep.subr.bf16.mxu0 %v967_v7 }
  0xb7   :  { %v73_v53 = vpop.permute.xlu0 %72 }
  0xb8   :  { %v1096_v54 = vmul.f32 %v593_v52, %v73_v53 }
  0xba   :  { %v85_v55 = vand.u32 2139095040, %v1096_v54  ;;  %v82_v59 = vand.u32 2147483647, %v1096_v54  ;;  %vm84_vm8 = vcmp.lt.s32.totalorder %v1096_v54, 0 }
  0xbc   :  { %v86_v56 = vshrl.u32 %v85_v55, 23  ;;  %v89_v62 = vand.u32 8388607, %v82_v59  ;;  %vm83_vm9 = vcmp.le.f32.partialorder %v82_v59, 0.7853982 }
  0xbe   :  { %v594_v57 = vadd.s32 4294967169, %v86_v56  ;;  %v90_v18 = vor.u32 8388608, %v89_v62 }
  0xc0   :  { %v92_v58 = vadd.s32 1, %v594_v57  ;;  %v130_v33 = vshll.u32 %v90_v18, 8 }
  0xc2   :  { %vm93_vm1 = vcmp.gt.s32.totalorder %v92_v58, 0 }
  0xc3   :  { %v94_v60 = vsel %vm93_vm1, %v92_v58, 0  ;;  %vm174_vm1 = vweird.f32 %v1096_v54 }
  0xc4   :  { %v96_v61 = vand.u32 31, %v94_v60  ;;  %v95_v0 = vshrl.u32 %v94_v60, 5 }
  0xc6   :  { %v97_v63 = vsub.s32 32, %v96_v61  ;;  %v99_v2 = vshll.u32 %v970_v1, %v96_v61  ;;  %v102_v4 = vshll.u32 %v971_v3, %v96_v61  ;;  %v105_v9 = vshll.u32 %v972_v6, %v96_v61 }
  0xc7   :  { %v108_v12 = vshll.u32 %v973_v10, %v96_v61  ;;  %v111_v15 = vshll.u32 %v974_v13, %v96_v61  ;;  %vm114_vm2 = vcmp.lt.s32.totalorder %v95_v0, 1  ;;  %vm117_vm3 = vcmp.lt.s32.totalorder %v95_v0, 4 }
  0xc8   :  { %v100_v5 = vshrl.u32 %v971_v3, %v97_v63  ;;  %v103_v8 = vshrl.u32 %v972_v6, %v97_v63  ;;  %v106_v11 = vshrl.u32 %v973_v10, %v97_v63  ;;  %v109_v14 = vshrl.u32 %v974_v13, %v97_v63 }
  0xc9   :  { %v112_v17 = vshrl.u32 %v975_v16, %v97_v63  ;;  %v98_v27 = vshrl.u32 %v970_v1, %v97_v63  ;;  %vm116_vm4 = vcmp.lt.s32.totalorder %v95_v0, 3  ;;  %vm115_vm5 = vcmp.lt.s32.totalorder %v95_v0, 2 }
  0xca   :  { %v101_v19 = vor.u32 %v100_v5, %v99_v2  ;;  %v104_v20 = vor.u32 %v103_v8, %v102_v4  ;;  %v107_v21 = vor.u32 %v106_v11, %v105_v9  ;;  %v110_v22 = vor.u32 %v109_v14, %v108_v12 }
  0xcb   :  { %v113_v23 = vor.u32 %v112_v17, %v111_v15 }
  0xcc   :  { %v119_v24 = vsel %vm117_vm3, %v107_v21, 2102212464  ;;  %v122_v25 = vsel %vm114_vm2, %v101_v19, %v104_v20  ;;  %v126_v26 = vsel %vm114_vm2, %v104_v20, %v107_v21  ;;  %v123_v28 = vsel %vm117_vm3, %v110_v22, 920167782 }
  0xcd   :  { %v127_v29 = vsel %vm117_vm3, %v113_v23, 1326507024  ;;  %v124_v30 = vsel %vm116_vm4, %v107_v21, %v123_v28  ;;  %v118_v34 = vsel %vm114_vm2, %v98_v27, %v101_v19  ;;  %v120_v35 = vsel %vm116_vm4, %v104_v20, %v119_v24  ;;  %v476_v27 = vld [vmem:[#allocation7] sm:$0xff]  ;;  %v477_v28 = vld [vmem:[#allocation7 + $0x8] sm:$0xff] }
  0xce   :  { %v128_v31 = vsel %vm116_vm4, %v110_v22, %v127_v29  ;;  %v125_v36 = vsel %vm115_vm5, %v122_v25, %v124_v30  ;;  %v121_v42 = vsel %vm115_vm5, %v118_v34, %v120_v35  ;;  %v811_v29 = vpack.c.bf16 %v477_v28, %v476_v27  ;;  %v478_v30 = vld [vmem:[#allocation7 + $0x10] sm:$0xff]  ;;  %v481_v34 = vld [vmem:[#allocation7 + $0x28] sm:$0xff] }
  0xcf   :  { %v129_v37 = vsel %vm115_vm5, %v126_v26, %v128_v31  ;;  %v1105_v40 = vmul.u32.u64.low %v130_v33, %v125_v36  ;;  %v1106_v41 = vmul.u32.u64.high %v130_v33, %v125_v36, %v1105_v40  ;;  %v137_v44 = vmul.u32 %v130_v33, %v121_v42  ;;  %v479_v31 = vld [vmem:[#allocation7 + $0x18] sm:$0xff]  ;;  %v482_v36 = vld [vmem:[#allocation7 + $0x30] sm:$0xff] }
  0xd0   :  { %v1102_v38 = vmul.u32.u64.low %v130_v33, %v129_v37  ;;  %v1103_v39 = vmul.u32.u64.high %v130_v33, %v129_v37, %v1102_v38  ;;  %v814_v33 = vpack.c.bf16 %v479_v31, %v478_v30  ;;  %v487_v42 = vld [vmem:[#allocation7 + $0x58] sm:$0xff] }
  0xd1   :  { %v140_v43 = vadd.s32 1, %v1106_v41  ;;  %v484_v38 = vld [vmem:[#allocation7 + $0x40] sm:$0xff] }
  0xd2   :  { %vm139_vm6 = vc.u32 %v1103_v39, %v1105_v40  ;;  %v138_v57 = vadd.s32 %v1105_v40, %v1103_v39  ;;  %v485_v39 = vld [vmem:[#allocation7 + $0x48] sm:$0xff] }
  0xd3   :  { %v141_v45 = vsel %vm139_vm6, %v140_v43, %v1106_v41  ;;  %v823_v40 = vpack.c.bf16 %v485_v39, %v484_v38  ;;  %v486_v41 = vld [vmem:[#allocation7 + $0x50] sm:$0xff] }
  0xd4   :  { %v142_v46 = vadd.s32 %v141_v45, %v137_v44  ;;  %v826_v43 = vpack.c.bf16 %v487_v42, %v486_v41  ;;  %v488_v44 = vld [vmem:[#allocation7 + $0x60] sm:$0xff]  ;;  %v489_v45 = vld [vmem:[#allocation7 + $0x68] sm:$0xff] }
  0xd6   :  { %v143_v47 = vadd.s32 536870912, %v142_v46 }
  0xd8   :  { %v144_v48 = vshrl.u32 %v143_v47, 30  ;;  %v490_v47 = vld [vmem:[#allocation7 + $0x70] sm:$0xff] }
  0xda   :  { %v145_v49 = vshll.u32 %v144_v48, 30  ;;  %v168_v6 = vsub.s32 4, %v144_v48 }
  0xdc   :  { %v146_v50 = vsub.s32 %v142_v46, %v145_v49  ;;  %v169_v10 = vsel %vm84_vm8, %v168_v6, %v144_v48  ;;  %v829_v46 = vpack.c.bf16 %v489_v45, %v488_v44  ;;  %v491_v48 = vld [vmem:[#allocation7 + $0x78] sm:$0xff] }
  0xdd   :  { %v171_v12 = vsel %vm83_vm9, 0, %v169_v10  ;;  %v832_v49 = vpack.c.bf16 %v491_v48, %v490_v47 }
  0xde   :  { %v148_v51 = vsub.s32 0, %v146_v50  ;;  %v175_v13 = vadd.s32 3, %v171_v12  ;;  %v295_v14 = vand.u32 3, %v171_v12 }
  0xe0   :  { %v595_v52 = vmin.u32 %v148_v51, %v146_v50  ;;  %v176_v15 = vand.u32 3, %v175_v13  ;;  %vm300_vm10 = vcmp.eq.s32.totalorder %v295_v14, 2  ;;  %vm297_vm12 = vcmp.eq.s32.totalorder %v295_v14, 0 }
  0xe1   :  { %vm296_vm14 = vcmp.lt.s32.totalorder %v295_v14, 2 }
  0xe2   :  { %v150_v53 = vclz %v595_v52  ;;  %vm181_vm11 = vcmp.eq.s32.totalorder %v176_v15, 2  ;;  %vm178_vm13 = vcmp.eq.s32.totalorder %v176_v15, 0  ;;  %vm177_vm15 = vcmp.lt.s32.totalorder %v176_v15, 2  ;;  %v602_v52 = vld [vmem:[%s1148_s4] ss:$0 sm:$0xff]  ;;  %s976_s4 = smov [#allocation8]  }
  0xe3   :  { %s583_s19 = sshll.u32 %s976_s4, 4  ;;  %s584_s19 = int_to_ptr.vmem [resolvable:$true] %s583_s19 }
  0xe4   :  { %v596_v55 = vadd.s32 4294967294, %v150_v53  ;;  %s933_s20 = scalar_lea.vmem %s584_s19, 32  ;;  %p938_p11 = scmp.lt.s32.totalorder %s584_s19, %s584_s19 }
  0xe5   :  { %p934_p10 = scmp.ne.s32.totalorder %s584_s19, %s933_s20  ;;  %p939_p12 = scmp.lt.s32.totalorder %s933_s20, %s933_s20 }
  0xe6   :  { %vm597_vm7 = vcmp.lt.s32.totalorder %v596_v55, 0 }
  0xe7   :  { %v153_v56 = vsel %vm597_vm7, 0, %v596_v55  ;;  %p940_p13 = por %p939_p12, %p938_p11 }
  0xe8   :  { %v154_v58 = vsub.s32 32, %v153_v56  ;;  %v158_v60 = vsub.s32 4294967266, %v153_v56  ;;  %v155_v61 = vshll.u32 %v146_v50, %v153_v56 }
  0xe9   :  { %p941_p0 = pnand %p940_p13, %p934_p10 }
  0xea   :  { %v156_v62 = vshrl.u32 %v138_v57, %v154_v58  ;;  %v159_v63 = vadd.s32 127, %v158_v60 }
  0xec   :  { %v157_v0 = vor.u32 %v156_v62, %v155_v61  ;;  %v160_v1 = vshll.u32 %v159_v63, 23  ;;  %v604_v63 = vld [vmem:[%s1150_s6] ss:$0 sm:$0xff] }
  0xee   :  { %v161_v2 = vor.u32 4788187, %v160_v1  ;;  %v164_v4 = vcvt.s32.f32 %v157_v0 }
  0xf0   :  { %v162_v3 = vand.u32 2147483647, %v161_v2 }
  0xf2   :  { %v165_v5 = vmul.f32 %v164_v4, %v162_v3 }
  0xf4   :  { %v166_v8 = vxor.u32 2147483648, %v165_v5 }
  0xf6   :  { %v167_v9 = vsel %vm84_vm8, %v166_v8, %v165_v5 }
  0xf7   :  { %v170_v11 = vsel %vm83_vm9, %v1096_v54, %v167_v9  ;;  %v480_v54 = vld [vmem:[#allocation7 + $0x20] sm:$0xff] }
  0xf8   :  { %855 = vcosq.f32 %v170_v11  ;;  %v817_v35 = vpack.c.bf16 %v481_v34, %v480_v54 }
  0xf9   :  { %857 = vsinq.f32 %v170_v11 }
 0x102   :  { %v856_v16 = vpop.eup %855 }
 0x103   :  { %v858_v17 = vpop.eup %857  ;;  %v182_v18 = vxor.u32 2147483648, %v856_v16 }
 0x104   :  { %v179_v19 = vxor.u32 2147483648, %v858_v17 }
 0x105   :  { %v302_v20 = vsel %vm300_vm10, %v182_v18, %v858_v17  ;;  %v183_v21 = vsel %vm181_vm11, %v182_v18, %v858_v17 }
 0x106   :  { %v299_v59 = vsel %vm297_vm12, %v856_v16, %v179_v19  ;;  %v180_v22 = vsel %vm178_vm13, %v856_v16, %v179_v19 }
 0x107   :  { %v303_v23 = vsel %vm296_vm14, %v299_v59, %v302_v20  ;;  %v184_v24 = vsel %vm177_vm15, %v180_v22, %v183_v21 }
 0x108   :  { %v304_v25 = vsel %vm174_vm1, nan, %v303_v23  ;;  %v185_v26 = vsel %vm174_vm1, nan, %v184_v24 }
 0x109   :  { %690 = vmatmul.mubr.f32.vlgmr.msra.gmra.mrb[0].mxu0 %v304_v25  ;;  %725 = vmatmul.mubr.f32.vlgmr.msra.gmra.mrb[0].mxu1 %v185_v26 }
 0x10a   :  { %759 = vmatprep.mubr.msk.f32.mxu0 %vm968_vm0, %v969_v32  ;;  %812 = vmatpush3.bf16.msra.mxu0 %v811_v29  ;;  %v483_v32 = vld [vmem:[#allocation7 + $0x38] sm:$0xff] }
 0x10b   :  { %813 = vmatprep.subr.bf16.mxu0 %v967_v7  ;;  %v820_v37 = vpack.c.bf16 %v483_v32, %v482_v36 }
 0x10e   :  { %815 = vmatpush3.bf16.msra.mxu0 %v814_v33 }
 0x10f   :  { %816 = vmatprep.subr.bf16.mxu0 %v967_v7 }
 0x112   :  { %818 = vmatpush3.bf16.msra.mxu0 %v817_v35 }
 0x113   :  { %819 = vmatprep.subr.bf16.mxu0 %v967_v7 }
 0x116   :  { %821 = vmatpush3.bf16.msra.mxu0 %v820_v37 }
 0x117   :  { %822 = vmatprep.subr.bf16.mxu0 %v967_v7 }
 0x11a   :  { %824 = vmatpush3.bf16.msra.mxu0 %v823_v40 }
 0x11b   :  { %825 = vmatprep.subr.bf16.mxu0 %v967_v7 }
 0x11e   :  { %827 = vmatpush3.bf16.msra.mxu0 %v826_v43 }
 0x11f   :  { %828 = vmatprep.subr.bf16.mxu0 %v967_v7 }
 0x122   :  { %830 = vmatpush3.bf16.msra.mxu0 %v829_v46 }
 0x123   :  { %831 = vmatprep.subr.bf16.mxu0 %v967_v7 }
 0x126   :  { %833 = vmatpush3.bf16.msra.mxu0 %v832_v49 }
 0x1dc   :  { %v387_v50 = vpop.f32.mrb[0].mxu0  ;;  %v457_v51 = vpop.f32.mrb[0].mxu1 }
 0x1dd   :  { %v458_v53 = vadd.f32 %v457_v51, %v387_v50  ;;  %v691_v55 = vpop.f32.mrb[1].mxu0  ;;  %v726_v56 = vpop.f32.mrb[1].mxu1 }
 0x1df   :  { %v468_v57 = vadd.f32 %v602_v52, %v458_v53 }
 0x1e1   :  { %v603_v58 = vmul.f32 -1.442695, %v468_v57 }
 0x1e3   :  { %859 = vpow2.f32 %v603_v58 }
 0x1ed   :  { %v860_v60 = vpop.eup %859 }
 0x1ee   :  { %v472_v61 = vadd.f32 1.0, %v860_v60 }
 0x1f0   :  { %861 = vrcp.f32 %v472_v61 }
 0x1fa   :  { %v862_v7 = vpop.eup %861 }
 0x1fb   :  { %v475_v62 = vmul.f32 %v862_v7, %v468_v57 }
 0x1fd   :  { %760 = vmatmul.mubr.f32.vlgmr.msra.gmra.mrb[2].mxu0 %v475_v62 }
 0x2d0   :  { %v565_v0 = vpop.f32.mrb[2].mxu0 }
 0x2d1   :  { %v566_v1 = vadd.f32 %v604_v63, %v565_v0  ;;  %v761_v2 = vpop.f32.mrb[3].mxu0 }
 0x2d3   :  { %v605_v3 = vmul.f32 -1.442695, %v566_v1 }
 0x2d5   :  { %863 = vpow2.f32 %v605_v3 }
 0x2df   :  { %v864_v4 = vpop.eup %863 }
 0x2e0   :  { %v572_v5 = vadd.f32 1.0, %v864_v4 }
 0x2e2   :  { %865 = vrcp.f32 %v572_v5 }
 0x2ec   :  { %v866_v6 = vpop.eup %865 }
 0x2ed   :  { %v575_v8 = vmul.f32 %v866_v6, %v566_v1 }
 0x2ef   :  { %576 = vst [vmem:[#allocation8] sm:$0x3] %v575_v8 }
 0x2f0   :  { %944 = shalt.err (!%p941_p0)
}
 0x2f1   :  { %s945_s22 = scalar_lea.hbm %s1151_s7, 32 }
 0x2f2   :  { %p946_p1 = scmp.ne.s32.totalorder %s1151_s7, %s945_s22  ;;  %p949_p2 = scmp.lt.u32.totalorder %s945_s22, %s1151_s7 }
 0x2f4   :  { %p951_p3 = pnand %p949_p2, %p946_p1 }
 0x2f6   :  { %954 = shalt.err (!%p951_p3)
}
 0x2f7   :  { %586 = dma.vmem_to_hbm [thread:$0]  %s584_s19, 32, %s1151_s7, [#allocation4]  }
 0x2f8   :  { %959 = dma.done.wait [#allocation4], 32  }
 0x2f9   :  { %960 = vsyncadd [#allocation4], 4294967264 }
 0x2fa   :  { %590 = vsyncpa [#allocation3], 1 }
 0x2fb   :  { %591 = vsyncpa [#allocation6], 1 }
 0x2fc   :  { %592 = vsyncpa [#allocation4], 1 }

</bundles_post_ra>
